<compile_context>
chip_gen: v5e
topology: v5e:2x2
jax: 0.10.0
libtpu: 0.0.40
codegen_flags: <defaults>
</compile_context>

<pallas_src>
import functools

import jax
import jax.numpy as jnp
from jax.experimental import pallas as pl
from jax.experimental.pallas import tpu as pltpu


def _kinematic_head_kernel(x_ref, w_ref, b_ref, g_ref, o_ref):
    """x_ref: (TN, C)  w_ref: (C, B3)  b_ref: (1, B3)  g_ref: (B3, B3)
    o_ref: (TN, B3)."""
    # 1x1 Conv1d == matmul + bias (MXU), f32 accumulation.
    y = jnp.dot(x_ref[...], w_ref[...], preferred_element_type=jnp.float32)
    y = y + b_ref[...]

    # Per-bone (groups of 3 lanes) squared L2 norm without touching the lane
    # layout: norm_sq[n, o] = sum_{o' : o'//3 == o//3} y[n, o']^2, computed as
    # (y*y) @ G with G the block-diagonal group matrix (VMEM-resident).
    norm_sq = jnp.dot(y * y, g_ref[...], preferred_element_type=jnp.float32)

    # rsqrt lowers to the EUP (its own VLIW slot) instead of sqrt + VPU divide.
    o_ref[...] = (y * jax.lax.rsqrt(norm_sq)).astype(o_ref.dtype)


def _round_up(v, m):
    return (v + m - 1) // m * m


@functools.partial(jax.jit, static_argnames=("num_bones", "compute_dtype"))
def human_kinematic_head_forward(x, weight, bias, num_bones,
                                 compute_dtype=None):
    """Forward pass.

    Args:
      x: (N, C, 1) input (NCW, matching the PyTorch Conv1d input).
      weight: (num_bones*3, C, 1) Conv1d weight.
      bias: (num_bones*3,) Conv1d bias.
      num_bones: number of bones B.
      compute_dtype: dtype fed to the MXU for x / W.  None (default) keeps
        x.dtype and avoids an extra wrapper-side cast pass over x; pass
        jnp.bfloat16 when the producer of x is already bf16.

    Returns:
      (N, num_bones, 3) unit direction vectors, x.dtype.
    """
    assert x.ndim == 3 and x.shape[2] == 1, f"Invalid shape {x.shape}"
    n, c, _ = x.shape
    b3 = num_bones * 3
    assert weight.shape == (b3, c, 1)
    assert bias.shape == (b3,)

    out_dtype = x.dtype
    if compute_dtype is None:
        compute_dtype = x.dtype

    # Layout: 2-D slabs.  Batch rows on the sublane axis, channels on lanes.
    x2d = x[:, :, 0]                                   # (N, C) reshape, free
    if x2d.dtype != compute_dtype:
        x2d = x2d.astype(compute_dtype)
    w2d = weight[:, :, 0].T.astype(compute_dtype)      # (C, B3), tiny
    b2d = bias.reshape(1, b3).astype(jnp.float32)      # (1, B3)

    # Block-diagonal group-sum matrix, built once (hoisted out of the kernel).
    gidx = jnp.arange(b3, dtype=jnp.int32) // 3
    gmat = (gidx[:, None] == gidx[None, :]).astype(jnp.float32)  # (B3, B3)

    # Batch tiling: TN multiple of 8, up to 512; pad N so TN divides it.
    tile_n = max(8, min(512, _round_up(n, 8)))
    n_pad = _round_up(n, tile_n)
    if n_pad != n:
        x2d = jnp.pad(x2d, ((0, n_pad - n), (0, 0)))
    num_tiles = n_pad // tile_n

    itemsize = jnp.dtype(compute_dtype).itemsize
    cost = pl.CostEstimate(
        flops=2 * n_pad * c * b3 + 2 * n_pad * b3 * b3 + 3 * n_pad * b3,
        transcendentals=n_pad * b3,
        bytes_accessed=(n_pad * c * itemsize            # x read
                        + c * b3 * itemsize             # W read
                        + b3 * 4 + b3 * b3 * 4          # bias + G read
                        + n_pad * b3 * jnp.dtype(out_dtype).itemsize),  # out
    )

    out_flat = pl.pallas_call(
        _kinematic_head_kernel,
        out_shape=jax.ShapeDtypeStruct((n_pad, b3), out_dtype),
        grid_spec=pltpu.PrefetchScalarGridSpec(
            num_scalar_prefetch=0,
            grid=(num_tiles,),
            in_specs=[
                pl.BlockSpec((tile_n, c), lambda i: (i, 0)),   # x tile streams
                pl.BlockSpec((c, b3), lambda i: (0, 0)),       # W resident
                pl.BlockSpec((1, b3), lambda i: (0, 0)),       # bias resident
                pl.BlockSpec((b3, b3), lambda i: (0, 0)),      # gmat resident
            ],
            out_specs=pl.BlockSpec((tile_n, b3), lambda i: (i, 0)),
        ),
        compiler_params=pltpu.CompilerParams(
            dimension_semantics=("parallel",),   # megacore on v7x; no-op 1-TC
        ),
        cost_estimate=cost,
    )(x2d, w2d, b2d, gmat)

    return out_flat[:n].reshape(n, num_bones, 3)


def _reference_forward(x, weight, bias, num_bones):
    """Pure-JAX f32 reference mirroring the PyTorch module."""
    n = x.shape[0]
    y = jnp.einsum("ncl,ocl->nol", x, weight) + bias[None, :, None]  # (N,B3,1)
    y = y.reshape(n, num_bones, 3)
    return y / jnp.linalg.norm(y, axis=-1, keepdims=True)


if __name__ == "__main__":
    # Small synthetic config: in_channels=32, num_bones=16 (-> 48 out channels).
    N = 2
    IN_CHANNELS = 32
    NUM_BONES = 16
    B3 = NUM_BONES * 3

    key = jax.random.PRNGKey(0)
    k_x, k_w, k_b = jax.random.split(key, 3)

    x = jax.random.normal(k_x, (N, IN_CHANNELS, 1), dtype=jnp.float32)
    weight = jax.random.normal(k_w, (B3, IN_CHANNELS, 1), dtype=jnp.float32) * 0.1
    bias = jax.random.normal(k_b, (B3,), dtype=jnp.float32) * 0.01

    ref = _reference_forward(x, weight, bias, NUM_BONES)

    # Default path (f32 compute): bit-close to the PyTorch/f32 reference.
    out_f32 = human_kinematic_head_forward(x, weight, bias, NUM_BONES)
    out_f32 = jax.block_until_ready(out_f32)
    assert out_f32.shape == (N, NUM_BONES, 3)
    assert jnp.allclose(out_f32, ref, atol=1e-5, rtol=1e-5), "f32 mismatch"
    assert jnp.allclose(jnp.linalg.norm(out_f32, axis=-1), 1.0, atol=1e-5)

    # Optional bf16 MXU path: looser tolerance on unit direction vectors.
    out_bf16 = human_kinematic_head_forward(
        x, weight, bias, NUM_BONES, compute_dtype=jnp.bfloat16)
    out_bf16 = jax.block_until_ready(out_bf16)
    assert out_bf16.shape == (N, NUM_BONES, 3)
    assert jnp.allclose(out_bf16, ref, atol=2e-2), "bf16 mismatch"
    assert jnp.allclose(jnp.linalg.norm(out_bf16, axis=-1), 1.0, atol=1e-3)

    print("KERNEL_OK")
</pallas_src>

<mosaic_0001>
module attributes {stable_mosaic.version = 11 : i64} {
  func.func @_kinematic_head_kernel(%arg0: i32, %arg1: memref<8x32xf32, #tpu.memory_space<vmem>>, %arg2: memref<32x48xf32, #tpu.memory_space<vmem>>, %arg3: memref<1x48xf32, #tpu.memory_space<vmem>>, %arg4: memref<48x48xf32, #tpu.memory_space<vmem>>, %arg5: memref<8x48xf32, #tpu.memory_space<vmem>>) attributes {dimension_semantics = [#tpu.dimension_semantics<parallel>], iteration_bounds = array<i64: 1>, scalar_prefetch = 0 : i64, scratch_operands = 0 : i64, tpu.core_type = #tpu.core_type<tc>, window_params = [{transform_indices = @transform_0, window_bounds = array<i64: 8, 32>}, {pipeline_mode = #tpu.pipeline_mode<synchronous>, transform_indices = @transform_1, window_bounds = array<i64: 32, 48>}, {pipeline_mode = #tpu.pipeline_mode<synchronous>, transform_indices = @transform_2, window_bounds = array<i64: 1, 48>}, {pipeline_mode = #tpu.pipeline_mode<synchronous>, transform_indices = @transform_3, window_bounds = array<i64: 48, 48>}, {transform_indices = @transform_4, window_bounds = array<i64: 8, 48>}]} {
    %c0 = arith.constant 0 : index
    %c0_0 = arith.constant 0 : index
    %0 = vector.load %arg1[%c0, %c0_0] : memref<8x32xf32, #tpu.memory_space<vmem>>, vector<8x32xf32>
    %c0_1 = arith.constant 0 : index
    %c0_2 = arith.constant 0 : index
    %1 = vector.load %arg2[%c0_1, %c0_2] : memref<32x48xf32, #tpu.memory_space<vmem>>, vector<32x48xf32>
    %cst = arith.constant dense<0.000000e+00> : vector<8x48xf32>
    %2 = tpu.matmul %0, %1, %cst {dimension_numbers = #tpu.dot_dimension_numbers<[1], [0], [0], [1], [0, 0, 1, 1], [], []>} : vector<8x32xf32>, vector<32x48xf32>, vector<8x48xf32> -> vector<8x48xf32>
    %c0_3 = arith.constant 0 : index
    %c0_4 = arith.constant 0 : index
    %3 = vector.load %arg3[%c0_3, %c0_4] : memref<1x48xf32, #tpu.memory_space<vmem>>, vector<1x48xf32>
    %4 = vector.broadcast %3 : vector<1x48xf32> to vector<8x48xf32>
    %5 = arith.addf %2, %4 : vector<8x48xf32>
    %6 = arith.mulf %5, %5 : vector<8x48xf32>
    %c0_5 = arith.constant 0 : index
    %c0_6 = arith.constant 0 : index
    %7 = vector.load %arg4[%c0_5, %c0_6] : memref<48x48xf32, #tpu.memory_space<vmem>>, vector<48x48xf32>
    %cst_7 = arith.constant dense<0.000000e+00> : vector<8x48xf32>
    %8 = tpu.matmul %6, %7, %cst_7 {dimension_numbers = #tpu.dot_dimension_numbers<[1], [0], [0], [1], [0, 0, 1, 1], [], []>} : vector<8x48xf32>, vector<48x48xf32>, vector<8x48xf32> -> vector<8x48xf32>
    %9 = math.rsqrt %8 : vector<8x48xf32>
    %10 = arith.mulf %5, %9 : vector<8x48xf32>
    %c0_8 = arith.constant 0 : index
    %c0_9 = arith.constant 0 : index
    %11 = vector.load %arg5[%c0_8, %c0_9] : memref<8x48xf32, #tpu.memory_space<vmem>>, vector<8x48xf32>
    tpu.vector_store %arg5[%c0_8, %c0_9], %10 {strides = array<i32>} : memref<8x48xf32, #tpu.memory_space<vmem>>, vector<8x48xf32>,
    return
  }
  func.func @transform_0(%arg0: i32) -> (i32, i32) {
    %c0_i32 = arith.constant 0 : i32
    %c0_i32_0 = arith.constant 0 : i32
    return %arg0, %c0_i32 : i32, i32
  }
  func.func @transform_1(%arg0: i32) -> (i32, i32) {
    %c0_i32 = arith.constant 0 : i32
    %c0_i32_0 = arith.constant 0 : i32
    %c0_i32_1 = arith.constant 0 : i32
    return %c0_i32, %c0_i32_0 : i32, i32
  }
  func.func @transform_2(%arg0: i32) -> (i32, i32) {
    %c0_i32 = arith.constant 0 : i32
    %c0_i32_0 = arith.constant 0 : i32
    %c0_i32_1 = arith.constant 0 : i32
    return %c0_i32, %c0_i32_0 : i32, i32
  }
  func.func @transform_3(%arg0: i32) -> (i32, i32) {
    %c0_i32 = arith.constant 0 : i32
    %c0_i32_0 = arith.constant 0 : i32
    %c0_i32_1 = arith.constant 0 : i32
    return %c0_i32, %c0_i32_0 : i32, i32
  }
  func.func @transform_4(%arg0: i32) -> (i32, i32) {
    %c0_i32 = arith.constant 0 : i32
    %c0_i32_0 = arith.constant 0 : i32
    return %arg0, %c0_i32 : i32, i32
  }
}

</mosaic_0001>

<bundles_post_ra>
// kernel: human_kinematic_head_forward.1
= control target key start
LH: loop header
LB: loop body
LE: loop exit
PB: predicated region body
PF: predicated region fallthrough
CT: control target
= control target key end

     0   :  { %vm26_vm0 = vcmask 261120   ;;  %vm57_vm1 = vcmask 392192   ;;  %s168_s1 = inlined_call_operand.vmem [shape: f32[32,48], index: 1, kind: input, shape index: {}]   ;;  %s169_s3 = inlined_call_operand.vmem [shape: f32[48,48], index: 3, kind: input, shape index: {}]   ;;  %s170_s2 = inlined_call_operand.vmem [shape: f32[1,48], index: 2, kind: input, shape index: {}]   ;;  %s171_s0 = inlined_call_operand.vmem [shape: f32[8,32], index: 0, kind: input, shape index: {}]   ;;  %s172_s4 = inlined_call_operand.vmem [shape: f32[8,48], index: 4, kind: output, shape index: {}]  }
   0x1   :  { %v21_v0 = vld [vmem:[%s168_s1 + $0x18] sm:$0xff]  ;;  %v20_v1 = vld [vmem:[%s168_s1 + $0x10] sm:$0xff]  ;;  %v56_v2 = vld [vmem:[%s169_s3 + $0x28] sm:$0xff] }
   0x2   :  { %42 = vmatpush.msra.mxu0 %v21_v0  ;;  %v19_v3 = vld [vmem:[%s168_s1 + $0x8] sm:$0xff]  ;;  %71 = vmatpush.msra.mxu1 %v56_v2  ;;  %v55_v4 = vld [vmem:[%s169_s3 + $0x20] sm:$0xff]  ;;  %v54_v5 = vld [vmem:[%s169_s3 + $0x18] sm:$0xff] }
   0x3   :  { %v18_v6 = vld [vmem:[%s168_s1] sm:$0xff]  ;;  %v53_v8 = vld [vmem:[%s169_s3 + $0x10] sm:$0xff]  ;;  %v52_v9 = vld [vmem:[%s169_s3 + $0x8] sm:$0xff] }
   0x4   :  { %43 = vmatpush.msra.mxu0 %v20_v1  ;;  %72 = vmatpush.msra.mxu1 %v55_v4  ;;  %v17_v7 = vld [vmem:[%s171_s0] sm:$0xff] }
   0x5   :  { %v51_v10 = vld [vmem:[%s169_s3] sm:$0xff] }
   0x6   :  { %44 = vmatpush.msra.mxu0 %v19_v3  ;;  %73 = vmatpush.msra.mxu1 %v54_v5  ;;  %v99_v11 = vld [vmem:[%s170_s2] ss:$0 sm:$0xff] }
   0x8   :  { %45 = vmatpush.msra.mxu0 %v18_v6  ;;  %74 = vmatpush.msra.mxu1 %v53_v8 }
   0x9   :  { %97 = vmatmul.msk.f32.vlgmr.msra.gmra.mxu0 %vm26_vm0, %v17_v7 }
   0xa   :  { %75 = vmatpush.msra.mxu1 %v52_v9 }
   0xc   :  { %76 = vmatpush.msra.mxu1 %v51_v10 }
  0x86   :  { %v47_v12 = vpop.f32.mrf.mxu0 }
  0x87   :  { %v48_v13 = vadd.f32 %v99_v11, %v47_v12 }
  0x89   :  { %v50_v14 = vmul.f32 %v48_v13, %v48_v13 }
  0x8b   :  { %98 = vmatmul.msk.f32.vlgmr.msra.gmra.mxu1 %vm57_vm1, %v50_v14 }
 0x108   :  { %v78_v15 = vpop.f32.mrf.mxu1 }
 0x109   :  { %100 = vrsqrt.f32 %v78_v15  ;;  %vm87_vm3 = vweird.f32 %v78_v15 }
 0x10f   :  { %v101_v16 = vpop.eup %100 }
 0x110   :  { %v82_v17 = vmul.f32 %v101_v16, %v78_v15  ;;  %vm88_vm2 = vweird.f32 %v101_v16 }
 0x111   :  { %vm89_vm4 = vmor %vm87_vm3, %vm88_vm2 }
 0x112   :  { %v83_v18 = vmul.f32 %v101_v16, %v82_v17 }
 0x114   :  { %v84_v19 = vmul.f32 0.5, %v83_v18 }
 0x116   :  { %v85_v20 = vsub.f32 1.5, %v84_v19 }
 0x118   :  { %v86_v21 = vmul.f32 %v101_v16, %v85_v20 }
 0x11a   :  { %v90_v22 = vsel %vm89_vm4, %v101_v16, %v86_v21 }
 0x11b   :  { %v91_v23 = vmul.f32 %v90_v22, %v48_v13 }
 0x11d   :  { %92 = vst.msk [vmem:[%s172_s4] sm:$0xff] %vm57_vm1, %v91_v23 }

</bundles_post_ra>
